<compile_context>
chip_gen: v7x
topology: tpu7x:2x2x1
jax: 0.10.0
libtpu: 0.0.40
codegen_flags: <defaults>
</compile_context>

<pallas_src>
import functools

import jax
import jax.numpy as jnp
import numpy as np
from jax import lax
from jax.experimental import pallas as pl
from jax.experimental.pallas import tpu as pltpu


# ------------------------------ fused kernel --------------------------------

def _halo_rows(W):
    # Left halo rounded up to a sublane multiple (aligned main store); right
    # halo is the minimum W + 1 zero rows the 3x3 taps can reach.
    left = -(-(W + 1) // 8) * 8
    return left, W + 1


def _fused_bottleneck_kernel(x_ref, w1_ref, w2_ref, w3_ref,
                             b1_ref, b2_ref, b3_ref,
                             o_ref, p1_ref, *, H, W):
    M = H * W
    left, right = _halo_rows(W)
    Cmid = w1_ref.shape[1]

    # ---- conv1 (1x1) [BN1 scale folded into w1] + bias + relu. -------------
    y1 = jnp.dot(x_ref[...].astype(jnp.bfloat16), w1_ref[...],
                 preferred_element_type=jnp.float32)
    y1 = jnp.maximum(y1 + b1_ref[...], 0.0)                  # (M, Cmid) f32

    # ---- conv2 (3x3, pad=1, stride=1) as ONE im2col matmul + bias + relu. --
    # Zero ONLY the halo rows (interior [left, left+M) is fully overwritten by
    # y1 each step).  Done every step — safe under "parallel" batch sharding.
    p1_ref[pl.ds(0, left), :] = jnp.zeros((left, Cmid), p1_ref.dtype)
    p1_ref[pl.ds(left + M, right), :] = jnp.zeros((right, Cmid), p1_ref.dtype)
    p1_ref[pl.ds(left, M), :] = y1
    # TODO(synk): try a bf16 halo scratch (halves scratch VMEM / load traffic);
    # kept f32 here because packed-dtype slabs at odd sublane offsets can cost
    # relayout ops — needs a bundle-dump check before committing.

    col = lax.broadcasted_iota(jnp.int32, (M, 1), 0) % W     # hoisted masks
    not_left_edge = col > 0                                  # dx == 0 taps
    not_right_edge = col < (W - 1)                           # dx == 2 taps

    taps = []
    for dy in range(3):
        for dx in range(3):
            off = left + (dy - 1) * W + (dx - 1)             # static offset
            t = p1_ref[pl.ds(off, M), :].astype(jnp.bfloat16)
            if dx == 0:                                      # mask column wrap
                t = jnp.where(not_left_edge, t, 0.0)
            elif dx == 2:
                t = jnp.where(not_right_edge, t, 0.0)
            taps.append(t)
    im2col = jnp.concatenate(taps, axis=-1)                  # (M, 9*Cmid) bf16
    y2 = jnp.dot(im2col, w2_ref[...],                        # single MXU push
                 preferred_element_type=jnp.float32)
    y2 = jnp.maximum(y2 + b2_ref[...], 0.0)                  # (M, Cmid) f32

    # ---- conv3 (1x1) + bias + residual add + relu (lane-dense store). ------
    y3 = jnp.dot(y2.astype(jnp.bfloat16), w3_ref[...],
                 preferred_element_type=jnp.float32)
    o_ref[...] = jnp.maximum(y3 + b3_ref[...] + x_ref[...], 0.0
                             ).astype(o_ref.dtype)           # (M, Cexp)


# ------------------------------ wrapper --------------------------------------

def bottleneck_block(x_nchw, params):
    N, Cin, H, W = x_nchw.shape
    M = H * W
    Cmid = params["w1"].shape[1]
    Cexp = params["w3"].shape[1]
    # TODO(synk): stride>1 / identity_downsample not supported; module defaults
    # (stride=1, no downsample) require Cin == 4*Cmid == Cexp.
    assert Cexp == Cin and params["w2"].shape == (3, 3, Cmid, Cmid)

    # Channels-last at the block boundary (chain consecutive blocks in NHWC to
    # amortize); the kernel itself is channels-last end to end.
    x_nhwc = jnp.transpose(x_nchw, (0, 2, 3, 1)).reshape(N, M, Cin)

    # Fold eval-mode BN scales into the conv weight output channels (f32 math,
    # then bf16 MXU operands).  Only the bias adds remain in-kernel.
    w1 = (params["w1"] * params["s1"][0]).astype(jnp.bfloat16)
    w2 = (params["w2"] * params["s2"][0]).reshape(9 * Cmid, Cmid
                                                  ).astype(jnp.bfloat16)
    w3 = (params["w3"] * params["s3"][0]).astype(jnp.bfloat16)
    b1, b2, b3 = params["b1"], params["b2"], params["b3"]

    left, right = _halo_rows(W)
    scratch_rows = left + M + right

    flops = 2 * N * M * (Cin * Cmid + 9 * Cmid * Cmid + Cmid * Cexp)
    bytes_accessed = (4 * N * M * (Cin + Cexp)
                      + 2 * (w1.size + w2.size + w3.size)
                      + 4 * (2 * Cmid + Cexp))
    cost = pl.CostEstimate(flops=flops, transcendentals=0,
                           bytes_accessed=bytes_accessed)

    res = lambda n: (0, 0)   # resident (weights / biases) across grid steps

    out = pl.pallas_call(
        functools.partial(_fused_bottleneck_kernel, H=H, W=W),
        out_shape=jax.ShapeDtypeStruct((N, M, Cexp), x_nchw.dtype),
        grid=(N,),                      # parallel over batch (megacore / 2 TC)
        in_specs=[
            pl.BlockSpec((None, M, Cin), lambda n: (n, 0, 0)),   # x per-sample
            pl.BlockSpec((Cin, Cmid), res),                      # w1*s1
            pl.BlockSpec((9 * Cmid, Cmid), res),                 # w2*s2 (im2col)
            pl.BlockSpec((Cmid, Cexp), res),                     # w3*s3
            pl.BlockSpec((1, Cmid), res),                        # b1
            pl.BlockSpec((1, Cmid), res),                        # b2
            pl.BlockSpec((1, Cexp), res),                        # b3
        ],
        out_specs=pl.BlockSpec((None, M, Cexp), lambda n: (n, 0, 0)),
        scratch_shapes=[pltpu.VMEM((scratch_rows, Cmid), jnp.float32)],
        compiler_params=pltpu.CompilerParams(
            dimension_semantics=("parallel",),
            vmem_limit_bytes=48 * 1024 * 1024),
        cost_estimate=cost,
    )(x_nhwc, w1, w2, w3, b1, b2, b3)
    # TODO(synk): for large H*W add a spatial row-tile grid axis (re-reading a
    # W-row halo per tile) so per-step VMEM stays bounded on v7x (64 MiB) and
    # the pipeline gets more steps to hide DMA behind.
    return jnp.transpose(out.reshape(N, H, W, Cexp), (0, 3, 1, 2))


# ------------------------- deterministic parameters --------------------------

def init_params(key, in_channels, out_channels):
    cmid = out_channels
    cexp = out_channels * 4
    ks = jax.random.split(key, 18)
    eps = 1e-5

    def bn_fold(k5, c):
        # Fold eval-mode BN (gamma, beta, running stats) + conv bias into a
        # per-channel scale and bias: y = conv(x) * scale + bias.
        gamma = 1.0 + 0.1 * jax.random.normal(k5[0], (c,), jnp.float32)
        beta = 0.1 * jax.random.normal(k5[1], (c,), jnp.float32)
        rmean = 0.1 * jax.random.normal(k5[2], (c,), jnp.float32)
        rvar = 0.5 + jax.random.uniform(k5[3], (c,), jnp.float32)
        cbias = 0.1 * jax.random.normal(k5[4], (c,), jnp.float32)
        scale = gamma / jnp.sqrt(rvar + eps)
        bias = (cbias - rmean) * scale + beta
        return scale.reshape(1, c), bias.reshape(1, c)

    w1 = 0.1 * jax.random.normal(ks[0], (in_channels, cmid), jnp.float32)
    w2 = 0.1 * jax.random.normal(ks[1], (3, 3, cmid, cmid), jnp.float32)
    w3 = 0.1 * jax.random.normal(ks[2], (cmid, cexp), jnp.float32)
    s1, b1 = bn_fold(ks[3:8], cmid)
    s2, b2 = bn_fold(ks[8:13], cmid)
    s3, b3 = bn_fold(ks[13:18], cexp)
    return dict(w1=w1, w2=w2, w3=w3, s1=s1, b1=b1, s2=s2, b2=b2, s3=s3, b3=b3)


# ------------------------------ reference -----------------------------------

def reference_block(x_nchw, p):
    x = jnp.transpose(x_nchw, (0, 2, 3, 1))
    dn = ("NHWC", "HWIO", "NHWC")
    Cin = x.shape[-1]
    cmid = p["w1"].shape[1]
    cexp = p["w3"].shape[1]
    y = lax.conv_general_dilated(x, p["w1"].reshape(1, 1, Cin, cmid), (1, 1),
                                 "VALID", dimension_numbers=dn)
    y = jnp.maximum(y * p["s1"] + p["b1"], 0.0)
    y = lax.conv_general_dilated(y, p["w2"], (1, 1), [(1, 1), (1, 1)],
                                 dimension_numbers=dn)
    y = jnp.maximum(y * p["s2"] + p["b2"], 0.0)
    y = lax.conv_general_dilated(y, p["w3"].reshape(1, 1, cmid, cexp), (1, 1),
                                 "VALID", dimension_numbers=dn)
    y = jnp.maximum(y * p["s3"] + p["b3"] + x, 0.0)
    return jnp.transpose(y, (0, 3, 1, 2))


if __name__ == "__main__":
    key = jax.random.PRNGKey(0)
    kx, kp = jax.random.split(key)

    in_channels, out_channels = 32, 8   # in_channels == out_channels * 4
    N, H, W = 2, 8, 8
    x = jax.random.normal(kx, (N, in_channels, H, W), jnp.float32)
    params = init_params(kp, in_channels, out_channels)

    out = jax.jit(bottleneck_block)(x, params)
    out = jax.block_until_ready(out)

    ref = reference_block(x, params)   # f32 reference
    assert out.shape == (N, out_channels * 4, H, W)
    # bf16 MXU operands (f32 accumulation, BN scale folded into bf16 weights)
    # vs f32 reference -> loose tolerance.
    np.testing.assert_allclose(np.asarray(out), np.asarray(ref),
                               atol=5e-2, rtol=5e-2)
    print("KERNEL_OK")
</pallas_src>

<mosaic_0001>
module attributes {stable_mosaic.version = 11 : i64} {
  func.func @_fused_bottleneck_kernel(%arg0: i32, %arg1: memref<1x64x32xf32, #tpu.memory_space<vmem>>, %arg2: memref<32x8xbf16, #tpu.memory_space<vmem>>, %arg3: memref<72x8xbf16, #tpu.memory_space<vmem>>, %arg4: memref<8x32xbf16, #tpu.memory_space<vmem>>, %arg5: memref<1x8xf32, #tpu.memory_space<vmem>>, %arg6: memref<1x8xf32, #tpu.memory_space<vmem>>, %arg7: memref<1x32xf32, #tpu.memory_space<vmem>>, %arg8: memref<1x64x32xf32, #tpu.memory_space<vmem>>, %arg9: memref<89x8xf32, #tpu.memory_space<vmem>>) attributes {dimension_semantics = [#tpu.dimension_semantics<parallel>], iteration_bounds = array<i64: 2>, scalar_prefetch = 0 : i64, scratch_operands = 1 : i64, tpu.core_type = #tpu.core_type<tc>, window_params = [{transform_indices = @transform_0, window_bounds = array<i64: 1, 64, 32>}, {pipeline_mode = #tpu.pipeline_mode<synchronous>, transform_indices = @transform_1, window_bounds = array<i64: 32, 8>}, {pipeline_mode = #tpu.pipeline_mode<synchronous>, transform_indices = @transform_2, window_bounds = array<i64: 72, 8>}, {pipeline_mode = #tpu.pipeline_mode<synchronous>, transform_indices = @transform_3, window_bounds = array<i64: 8, 32>}, {pipeline_mode = #tpu.pipeline_mode<synchronous>, transform_indices = @transform_4, window_bounds = array<i64: 1, 8>}, {pipeline_mode = #tpu.pipeline_mode<synchronous>, transform_indices = @transform_5, window_bounds = array<i64: 1, 8>}, {pipeline_mode = #tpu.pipeline_mode<synchronous>, transform_indices = @transform_6, window_bounds = array<i64: 1, 32>}, {transform_indices = @transform_7, window_bounds = array<i64: 1, 64, 32>}]} {
    %c0 = arith.constant 0 : index
    %c0_0 = arith.constant 0 : index
    %c0_1 = arith.constant 0 : index
    %0 = vector.load %arg1[%c0, %c0_0, %c0_1] : memref<1x64x32xf32, #tpu.memory_space<vmem>>, vector<1x64x32xf32>
    %1 = vector.shape_cast %0 : vector<1x64x32xf32> to vector<64x32xf32>
    %2 = arith.truncf %1 : vector<64x32xf32> to vector<64x32xbf16>
    %c0_2 = arith.constant 0 : index
    %c0_3 = arith.constant 0 : index
    %3 = vector.load %arg2[%c0_2, %c0_3] : memref<32x8xbf16, #tpu.memory_space<vmem>>, vector<32x8xbf16>
    %cst = arith.constant dense<0.000000e+00> : vector<64x8xf32>
    %4 = tpu.matmul %2, %3, %cst {dimension_numbers = #tpu.dot_dimension_numbers<[1], [0], [0], [1], [0, 0, 1, 1], [], []>} : vector<64x32xbf16>, vector<32x8xbf16>, vector<64x8xf32> -> vector<64x8xf32>
    %c0_4 = arith.constant 0 : index
    %c0_5 = arith.constant 0 : index
    %5 = vector.load %arg5[%c0_4, %c0_5] : memref<1x8xf32, #tpu.memory_space<vmem>>, vector<1x8xf32>
    %6 = vector.broadcast %5 : vector<1x8xf32> to vector<64x8xf32>
    %7 = arith.addf %4, %6 : vector<64x8xf32>
    %cst_6 = arith.constant 0.000000e+00 : f32
    %8 = vector.broadcast %cst_6 : f32 to vector<64x8xf32>
    %9 = arith.maximumf %7, %8 : vector<64x8xf32>
    %cst_7 = arith.constant 0.000000e+00 : f32
    %10 = vector.broadcast %cst_7 : f32 to vector<16x8xf32>
    %c0_8 = arith.constant 0 : index
    %c0_9 = arith.constant 0 : index
    %11 = vector.load %arg9[%c0_8, %c0_9] : memref<89x8xf32, #tpu.memory_space<vmem>>, vector<16x8xf32>
    tpu.vector_store %arg9[%c0_8, %c0_9], %10 {strides = array<i32>} : memref<89x8xf32, #tpu.memory_space<vmem>>, vector<16x8xf32>,
    %cst_10 = arith.constant 0.000000e+00 : f32
    %12 = vector.broadcast %cst_10 : f32 to vector<9x8xf32>
    %c80 = arith.constant 80 : index
    %c0_11 = arith.constant 0 : index
    %13 = vector.load %arg9[%c80, %c0_11] : memref<89x8xf32, #tpu.memory_space<vmem>>, vector<9x8xf32>
    tpu.vector_store %arg9[%c80, %c0_11], %12 {strides = array<i32>} : memref<89x8xf32, #tpu.memory_space<vmem>>, vector<9x8xf32>,
    %c16 = arith.constant 16 : index
    %c0_12 = arith.constant 0 : index
    %14 = vector.load %arg9[%c16, %c0_12] : memref<89x8xf32, #tpu.memory_space<vmem>>, vector<64x8xf32>
    tpu.vector_store %arg9[%c16, %c0_12], %9 {strides = array<i32>} : memref<89x8xf32, #tpu.memory_space<vmem>>, vector<64x8xf32>,
    %15 = tpu.iota {dimensions = array<i32: 0>} : vector<64x1xi32>
    %c8_i32 = arith.constant 8 : i32
    %c0_i32 = arith.constant 0 : i32
    %16 = arith.cmpi eq, %c8_i32, %c0_i32 : i32
    %c1_i32 = arith.constant 1 : i32
    %17 = arith.select %16, %c1_i32, %c8_i32 : i32
    %18 = vector.broadcast %17 : i32 to vector<64x1xi32>
    %19 = arith.remsi %15, %18 : vector<64x1xi32>
    %c0_i32_13 = arith.constant 0 : i32
    %20 = vector.broadcast %c0_i32_13 : i32 to vector<64x1xi32>
    %21 = arith.cmpi ne, %19, %20 : vector<64x1xi32>
    %c0_i32_14 = arith.constant 0 : i32
    %22 = vector.broadcast %c0_i32_14 : i32 to vector<64x1xi32>
    %23 = arith.cmpi slt, %19, %22 : vector<64x1xi32>
    %c0_i32_15 = arith.constant 0 : i32
    %24 = arith.cmpi slt, %17, %c0_i32_15 : i32
    %25 = vector.broadcast %24 : i1 to vector<64x1xi1>
    %26 = vector.broadcast %25 : vector<64x1xi1> to vector<64x1xi1>
    %27 = arith.xori %23, %26 : vector<64x1xi1>
    %28 = arith.andi %27, %21 : vector<64x1xi1>
    %29 = vector.broadcast %17 : i32 to vector<64x1xi32>
    %30 = arith.addi %19, %29 : vector<64x1xi32>
    %31 = arith.select %28, %30, %19 : vector<64x1xi1>, vector<64x1xi32>
    %c0_i32_16 = arith.constant 0 : i32
    %32 = vector.broadcast %c0_i32_16 : i32 to vector<64x1xi32>
    %33 = arith.cmpi sgt, %31, %32 : vector<64x1xi32>
    %c7_i32 = arith.constant 7 : i32
    %34 = vector.broadcast %c7_i32 : i32 to vector<64x1xi32>
    %35 = arith.cmpi slt, %31, %34 : vector<64x1xi32>
    %c7 = arith.constant 7 : index
    %c0_17 = arith.constant 0 : index
    %36 = vector.load %arg9[%c7, %c0_17] : memref<89x8xf32, #tpu.memory_space<vmem>>, vector<64x8xf32>
    %37 = arith.truncf %36 : vector<64x8xf32> to vector<64x8xbf16>
    %cst_18 = arith.constant 0.000000e+00 : f32
    %38 = arith.truncf %cst_18 : f32 to bf16
    %39 = vector.shape_cast %33 : vector<64x1xi1> to vector<64x1xi1>
    %40 = vector.broadcast %39 : vector<64x1xi1> to vector<64x8xi1>
    %41 = vector.broadcast %38 : bf16 to vector<64x8xbf16>
    %42 = arith.select %40, %37, %41 : vector<64x8xi1>, vector<64x8xbf16>
    %c8 = arith.constant 8 : index
    %c0_19 = arith.constant 0 : index
    %43 = vector.load %arg9[%c8, %c0_19] : memref<89x8xf32, #tpu.memory_space<vmem>>, vector<64x8xf32>
    %44 = arith.truncf %43 : vector<64x8xf32> to vector<64x8xbf16>
    %c9 = arith.constant 9 : index
    %c0_20 = arith.constant 0 : index
    %45 = vector.load %arg9[%c9, %c0_20] : memref<89x8xf32, #tpu.memory_space<vmem>>, vector<64x8xf32>
    %46 = arith.truncf %45 : vector<64x8xf32> to vector<64x8xbf16>
    %cst_21 = arith.constant 0.000000e+00 : f32
    %47 = arith.truncf %cst_21 : f32 to bf16
    %48 = vector.shape_cast %35 : vector<64x1xi1> to vector<64x1xi1>
    %49 = vector.broadcast %48 : vector<64x1xi1> to vector<64x8xi1>
    %50 = vector.broadcast %47 : bf16 to vector<64x8xbf16>
    %51 = arith.select %49, %46, %50 : vector<64x8xi1>, vector<64x8xbf16>
    %c15 = arith.constant 15 : index
    %c0_22 = arith.constant 0 : index
    %52 = vector.load %arg9[%c15, %c0_22] : memref<89x8xf32, #tpu.memory_space<vmem>>, vector<64x8xf32>
    %53 = arith.truncf %52 : vector<64x8xf32> to vector<64x8xbf16>
    %cst_23 = arith.constant 0.000000e+00 : f32
    %54 = arith.truncf %cst_23 : f32 to bf16
    %55 = vector.shape_cast %33 : vector<64x1xi1> to vector<64x1xi1>
    %56 = vector.broadcast %55 : vector<64x1xi1> to vector<64x8xi1>
    %57 = vector.broadcast %54 : bf16 to vector<64x8xbf16>
    %58 = arith.select %56, %53, %57 : vector<64x8xi1>, vector<64x8xbf16>
    %c16_24 = arith.constant 16 : index
    %c0_25 = arith.constant 0 : index
    %59 = vector.load %arg9[%c16_24, %c0_25] : memref<89x8xf32, #tpu.memory_space<vmem>>, vector<64x8xf32>
    %60 = arith.truncf %59 : vector<64x8xf32> to vector<64x8xbf16>
    %c17 = arith.constant 17 : index
    %c0_26 = arith.constant 0 : index
    %61 = vector.load %arg9[%c17, %c0_26] : memref<89x8xf32, #tpu.memory_space<vmem>>, vector<64x8xf32>
    %62 = arith.truncf %61 : vector<64x8xf32> to vector<64x8xbf16>
    %cst_27 = arith.constant 0.000000e+00 : f32
    %63 = arith.truncf %cst_27 : f32 to bf16
    %64 = vector.shape_cast %35 : vector<64x1xi1> to vector<64x1xi1>
    %65 = vector.broadcast %64 : vector<64x1xi1> to vector<64x8xi1>
    %66 = vector.broadcast %63 : bf16 to vector<64x8xbf16>
    %67 = arith.select %65, %62, %66 : vector<64x8xi1>, vector<64x8xbf16>
    %c23 = arith.constant 23 : index
    %c0_28 = arith.constant 0 : index
    %68 = vector.load %arg9[%c23, %c0_28] : memref<89x8xf32, #tpu.memory_space<vmem>>, vector<64x8xf32>
    %69 = arith.truncf %68 : vector<64x8xf32> to vector<64x8xbf16>
    %cst_29 = arith.constant 0.000000e+00 : f32
    %70 = arith.truncf %cst_29 : f32 to bf16
    %71 = vector.shape_cast %33 : vector<64x1xi1> to vector<64x1xi1>
    %72 = vector.broadcast %71 : vector<64x1xi1> to vector<64x8xi1>
    %73 = vector.broadcast %70 : bf16 to vector<64x8xbf16>
    %74 = arith.select %72, %69, %73 : vector<64x8xi1>, vector<64x8xbf16>
    %c24 = arith.constant 24 : index
    %c0_30 = arith.constant 0 : index
    %75 = vector.load %arg9[%c24, %c0_30] : memref<89x8xf32, #tpu.memory_space<vmem>>, vector<64x8xf32>
    %76 = arith.truncf %75 : vector<64x8xf32> to vector<64x8xbf16>
    %c25 = arith.constant 25 : index
    %c0_31 = arith.constant 0 : index
    %77 = vector.load %arg9[%c25, %c0_31] : memref<89x8xf32, #tpu.memory_space<vmem>>, vector<64x8xf32>
    %78 = arith.truncf %77 : vector<64x8xf32> to vector<64x8xbf16>
    %cst_32 = arith.constant 0.000000e+00 : f32
    %79 = arith.truncf %cst_32 : f32 to bf16
    %80 = vector.shape_cast %35 : vector<64x1xi1> to vector<64x1xi1>
    %81 = vector.broadcast %80 : vector<64x1xi1> to vector<64x8xi1>
    %82 = vector.broadcast %79 : bf16 to vector<64x8xbf16>
    %83 = arith.select %81, %78, %82 : vector<64x8xi1>, vector<64x8xbf16>
    %84 = tpu.concatenate %42, %44, %51, %58, %60, %67, %74, %76, %83 in 1 : vector<64x8xbf16>, vector<64x8xbf16>, vector<64x8xbf16>, vector<64x8xbf16>, vector<64x8xbf16>, vector<64x8xbf16>, vector<64x8xbf16>, vector<64x8xbf16>, vector<64x8xbf16> -> vector<64x72xbf16>
    %c0_33 = arith.constant 0 : index
    %c0_34 = arith.constant 0 : index
    %85 = vector.load %arg3[%c0_33, %c0_34] : memref<72x8xbf16, #tpu.memory_space<vmem>>, vector<72x8xbf16>
    %cst_35 = arith.constant dense<0.000000e+00> : vector<64x8xf32>
    %86 = tpu.matmul %84, %85, %cst_35 {dimension_numbers = #tpu.dot_dimension_numbers<[1], [0], [0], [1], [0, 0, 1, 1], [], []>} : vector<64x72xbf16>, vector<72x8xbf16>, vector<64x8xf32> -> vector<64x8xf32>
    %c0_36 = arith.constant 0 : index
    %c0_37 = arith.constant 0 : index
    %87 = vector.load %arg6[%c0_36, %c0_37] : memref<1x8xf32, #tpu.memory_space<vmem>>, vector<1x8xf32>
    %88 = vector.broadcast %87 : vector<1x8xf32> to vector<64x8xf32>
    %89 = arith.addf %86, %88 : vector<64x8xf32>
    %cst_38 = arith.constant 0.000000e+00 : f32
    %90 = vector.broadcast %cst_38 : f32 to vector<64x8xf32>
    %91 = arith.maximumf %89, %90 : vector<64x8xf32>
    %92 = arith.truncf %91 : vector<64x8xf32> to vector<64x8xbf16>
    %c0_39 = arith.constant 0 : index
    %c0_40 = arith.constant 0 : index
    %93 = vector.load %arg4[%c0_39, %c0_40] : memref<8x32xbf16, #tpu.memory_space<vmem>>, vector<8x32xbf16>
    %cst_41 = arith.constant dense<0.000000e+00> : vector<64x32xf32>
    %94 = tpu.matmul %92, %93, %cst_41 {dimension_numbers = #tpu.dot_dimension_numbers<[1], [0], [0], [1], [0, 0, 1, 1], [], []>} : vector<64x8xbf16>, vector<8x32xbf16>, vector<64x32xf32> -> vector<64x32xf32>
    %c0_42 = arith.constant 0 : index
    %c0_43 = arith.constant 0 : index
    %95 = vector.load %arg7[%c0_42, %c0_43] : memref<1x32xf32, #tpu.memory_space<vmem>>, vector<1x32xf32>
    %96 = vector.broadcast %95 : vector<1x32xf32> to vector<64x32xf32>
    %97 = arith.addf %94, %96 : vector<64x32xf32>
    %c0_44 = arith.constant 0 : index
    %c0_45 = arith.constant 0 : index
    %c0_46 = arith.constant 0 : index
    %98 = vector.load %arg1[%c0_44, %c0_45, %c0_46] : memref<1x64x32xf32, #tpu.memory_space<vmem>>, vector<1x64x32xf32>
    %99 = vector.shape_cast %98 : vector<1x64x32xf32> to vector<64x32xf32>
    %100 = arith.addf %97, %99 : vector<64x32xf32>
    %cst_47 = arith.constant 0.000000e+00 : f32
    %101 = vector.broadcast %cst_47 : f32 to vector<64x32xf32>
    %102 = arith.maximumf %100, %101 : vector<64x32xf32>
    %c0_48 = arith.constant 0 : index
    %c0_49 = arith.constant 0 : index
    %c0_50 = arith.constant 0 : index
    %103 = vector.load %arg8[%c0_48, %c0_49, %c0_50] : memref<1x64x32xf32, #tpu.memory_space<vmem>>, vector<1x64x32xf32>
    %104 = vector.shape_cast %103 : vector<1x64x32xf32> to vector<64x32xf32>
    %105 = vector.shape_cast %102 : vector<64x32xf32> to vector<1x64x32xf32>
    tpu.vector_store %arg8[%c0_48, %c0_49, %c0_50], %105 {strides = array<i32>} : memref<1x64x32xf32, #tpu.memory_space<vmem>>, vector<1x64x32xf32>,
    return
  }
  func.func @transform_0(%arg0: i32) -> (i32, i32, i32) {
    %c0_i32 = arith.constant 0 : i32
    %c0_i32_0 = arith.constant 0 : i32
    %c0_i32_1 = arith.constant 0 : i32
    return %arg0, %c0_i32, %c0_i32_0 : i32, i32, i32
  }
  func.func @transform_1(%arg0: i32) -> (i32, i32) {
    %c0_i32 = arith.constant 0 : i32
    %c0_i32_0 = arith.constant 0 : i32
    %c0_i32_1 = arith.constant 0 : i32
    return %c0_i32, %c0_i32_0 : i32, i32
  }
  func.func @transform_2(%arg0: i32) -> (i32, i32) {
    %c0_i32 = arith.constant 0 : i32
    %c0_i32_0 = arith.constant 0 : i32
    %c0_i32_1 = arith.constant 0 : i32
    return %c0_i32, %c0_i32_0 : i32, i32
  }
  func.func @transform_3(%arg0: i32) -> (i32, i32) {
    %c0_i32 = arith.constant 0 : i32
    %c0_i32_0 = arith.constant 0 : i32
    %c0_i32_1 = arith.constant 0 : i32
    return %c0_i32, %c0_i32_0 : i32, i32
  }
  func.func @transform_4(%arg0: i32) -> (i32, i32) {
    %c0_i32 = arith.constant 0 : i32
    %c0_i32_0 = arith.constant 0 : i32
    %c0_i32_1 = arith.constant 0 : i32
    return %c0_i32, %c0_i32_0 : i32, i32
  }
  func.func @transform_5(%arg0: i32) -> (i32, i32) {
    %c0_i32 = arith.constant 0 : i32
    %c0_i32_0 = arith.constant 0 : i32
    %c0_i32_1 = arith.constant 0 : i32
    return %c0_i32, %c0_i32_0 : i32, i32
  }
  func.func @transform_6(%arg0: i32) -> (i32, i32) {
    %c0_i32 = arith.constant 0 : i32
    %c0_i32_0 = arith.constant 0 : i32
    %c0_i32_1 = arith.constant 0 : i32
    return %c0_i32, %c0_i32_0 : i32, i32
  }
  func.func @transform_7(%arg0: i32) -> (i32, i32, i32) {
    %c0_i32 = arith.constant 0 : i32
    %c0_i32_0 = arith.constant 0 : i32
    %c0_i32_1 = arith.constant 0 : i32
    return %arg0, %c0_i32, %c0_i32_0 : i32, i32, i32
  }
}

</mosaic_0001>

<bundles_post_ra>
// kernel: bottleneck_block.1
= control target key start
LH: loop header
LB: loop body
LE: loop exit
PB: predicated region body
PF: predicated region fallthrough
CT: control target
= control target key end

     0   :  { %12 = vsyncpa [#allocation4], 0  ;;  %s2120_s0 = inlined_call_operand.vmem [shape: f32[2,64,32], index: 0, kind: input, shape index: {}]   ;;  %s2121_s1 = inlined_call_operand.vmem [shape: bf16[32,8], index: 1, kind: input, shape index: {}]   ;;  %s2122_s2 = inlined_call_operand.vmem [shape: bf16[72,8], index: 2, kind: input, shape index: {}]   ;;  %s2123_s3 = inlined_call_operand.vmem [shape: bf16[8,32], index: 3, kind: input, shape index: {}]   ;;  %s2124_s4 = inlined_call_operand.vmem [shape: f32[1,8], index: 4, kind: input, shape index: {}]   ;;  %s2125_s5 = inlined_call_operand.vmem [shape: f32[1,8], index: 5, kind: input, shape index: {}]   ;;  %s2126_s6 = inlined_call_operand.vmem [shape: f32[1,32], index: 6, kind: input, shape index: {}]   ;;  %s2127_s7 = inlined_call_operand.hbm [shape: f32[2,64,32], index: 7, kind: output, shape index: {}]  }
   0x1   :  { %14 = vsyncpa [#allocation4 + $0x1], 0  ;;  %s1488_s24 = smov 0   ;;  %s1490_s25 = smov 0  }
   0x2   :  { %s1492_s26 = smov 0   ;;  %s1494_s27 = smov 0  }
   0x3 LB: > { %s1509_s28 = sadd.s32 4294967295, %s1434_s27   ;;  %s1209_s29 = sadd.s32 4294967294, %s1434_s27   ;;  %s1434_s27 = sphi %s1494_s27, %s2181_s27   ;;  %s1430_s26 = sphi %s1492_s26, %s2180_s26   ;;  %s1426_s25 = sphi %s1490_s25, %s2179_s25   ;;  %s1422_s24 = sphi %s1488_s24, %s2178_s24  }
   0x4   : > { %s1513_s30 = sadd.s32 1, %s1434_s27   ;;  %s179_s8 = sadd.s32 1, %s1430_s26 }
   0x5   : > { %s176_s9 = ssub.s32 %s1434_s27, %s1513_s30  ;;  %p189_p0 = scmp.ne.s32.totalorder %s1430_s26, %s1426_s25 }
   0x6   : > { %p177_p1 = scmp.eq.s32.totalorder %s176_s9, 0  ;;  %p190_p2 = scmp.eq.s32.totalorder %s1509_s28, 1 }
   0x7   : > { %p195_p3 = scmp.ne.s32.totalorder %s1426_s25, %s1422_s24  ;;  %p196_p4 = scmp.eq.s32.totalorder %s1209_s29, 1 }
   0x8   : > { %s1524_s10 = scalar_select %p177_p1, %s1430_s26, %s179_s8  }
   0x9   : > { %p1526_p5 = por %p190_p2, %p189_p0  ;;  %p1530_p6 = por %p196_p4, %p195_p3 }
   0xa   : > { %p1212_p7 = scmp.ge.s32.totalorder %s1434_s27, 1  ;;  %p240_p8 = scmp.lt.s32.totalorder %s1434_s27, 3 }
   0xc   : > { %p241_p9 = pnand %p1212_p7, %p240_p8 }
   0xd   : > { %v1365_v0 = vld [vmem:[%s2121_s1] sm:$0xff] (!%p241_p9)   ;;  %p272_p10 = scmp.lt.s32.totalorder (!%p241_p9), %s1509_s28, 1  ;;  %v1366_v1 = vld [vmem:[%s2121_s1 + $0x8] sm:$0xff] (!%p241_p9)   ;;  %vm315_vm0 = vcmask (!%p241_p9), 261120   ;;  %vm401_vm1 = vcmask (!%p241_p9), 64512   ;;  %v1436_v14 = vmov (!%p241_p9), 0.0   ;;  %v415_v15 = vlaneseq (!%p241_p9) }
   0xe   : > { %244 = sbr.rel (%p241_p9) target bundleno = 892 (0x37c), region = 48  ;;  %1273 = vmatprep.subr.bf16.mxu0 (!%p241_p9), %v1365_v0  ;;  %403 = vst.msk [vmem:[#allocation2 + $0x8] sm:$0xff] (!%p241_p9), %vm401_vm1, %v1436_v14  ;;  %402 = vst.msk [vmem:[#allocation2] sm:$0xff] (!%p241_p9), %vm401_vm1, %v1436_v14  ;;  %vm405_vm2 = vcmask (!%p241_p9), 57344   ;;  %v1581_v21 = vld [vmem:[%s2124_s4] ss:$0 sm:$0xff] (!%p241_p9) }
   0xf   : > { %1274 = vmatpush3.bf16.msra.mxu0 (!%p241_p9), %v1365_v0  ;;  %404 = vst.msk [vmem:[#allocation2 + $0x50] sm:$0xff] (!%p241_p9), %vm401_vm1, %v1436_v14  ;;  %v416_v16 = vshrl.u32 (!%p241_p9), %v415_v15, 7  ;;  %v1437_v52 = vmov (!%p241_p9), 0   ;;  %s1438_s29 = smov (!%p241_p9), 8   ;;  %s1439_s8 = smov (!%p241_p9), 32  }
  0x10   : > { %1275 = vmatprep.subr.bf16.mxu0 (!%p241_p9), %v1366_v1  ;;  %406 = vst.msk [vmem:[#allocation2 + $0x58] sm:$0x1] (!%p241_p9), %vm405_vm2, %v1436_v14  ;;  %s1440_s9 = smov (!%p241_p9), 16   ;;  %s1441_s15 = smov (!%p241_p9), 56  }
  0x11   : > { %v417_v17 = vadd.s32 (!%p241_p9), 8, %v416_v16  ;;  %v428_v18 = vand.u32 (!%p241_p9), 7, %v416_v16  ;;  %v418_v19 = vadd.s32 (!%p241_p9), 16, %v416_v16  ;;  %v419_v20 = vadd.s32 (!%p241_p9), 24, %v416_v16  ;;  %s1443_s23 = smov (!%p241_p9), 40   ;;  %s1444_s13 = smov (!%p241_p9), 48  }
  0x12   : > { %v1604_v34 = vadd.s32 (!%p241_p9), 32, %v416_v16  ;;  %v1614_v39 = vadd.s32 (!%p241_p9), 40, %v416_v16  ;;  %v1628_v44 = vadd.s32 (!%p241_p9), 48, %v416_v16  ;;  %v1638_v47 = vadd.s32 (!%p241_p9), 56, %v416_v16  ;;  %s269_s19 = sand.u32 (!%p241_p9), 1, %s1426_s25  }
  0x13   : > { %1276 = vmatpush3.bf16.msra.mxu0 (!%p241_p9), %v1366_v1  ;;  %v435_v22 = vand.u32 (!%p241_p9), 7, %v417_v17  ;;  %v442_v23 = vand.u32 (!%p241_p9), 7, %v418_v19  ;;  %vm1583_vm3 = vcmp.gt.s32.totalorder (!%p241_p9), %v428_v18, 0  ;;  %vm1587_vm4 = vcmp.lt.s32.totalorder (!%p241_p9), %v428_v18, 7  ;;  %s1213_s22 = sshll.u32 (!%p241_p9), %s269_s19, 6 }
  0x14   : > { %v449_v27 = vand.u32 (!%p241_p9), 7, %v419_v20  ;;  %vm564_vm7 = vmpackc.low (!%p241_p9), %vm1583_vm3, %vm1583_vm3  ;;  %v456_v48 = vand.u32 (!%p241_p9), 7, %v1604_v34  ;;  %v463_v50 = vand.u32 (!%p241_p9), 7, %v1614_v39  ;;  %v470_v60 = vand.u32 (!%p241_p9), 7, %v1628_v44  ;;  %v1371_v44 = vld [vmem:[%s2122_s2 + $0x20] ss:$0 sps:$4 sm:$0xff] (!%p241_p9)  }
  0x15   : > { %s273_s17 = scalar_select %p272_p10, %s1509_s28, 1  ;;  %vm1592_vm5 = vcmp.lt.s32.totalorder %v435_v22, 7  ;;  %vm1597_vm6 = vcmp.gt.s32.totalorder %v435_v22, 0  ;;  %vm640_vm8 = vmpackc.low %vm1587_vm4, %vm1587_vm4  ;;  %vm1610_vm9 = vcmp.gt.s32.totalorder %v442_v23, 0  ;;  %vm1631_vm13 = vcmp.lt.s32.totalorder %v442_v23, 7  ;;  %v536_v14 = vld [vmem:[#allocation2 + $0x7] sm:$0xff] }
  0x16   : > { %vm641_vm10 = vmpackc.low %vm1592_vm5, %vm1592_vm5  ;;  %vm1620_vm11 = vcmp.gt.s32.totalorder %v449_v27, 0  ;;  %vm1642_vm15 = vcmp.lt.s32.totalorder %v449_v27, 7  ;;  %v648_v53 = vsel %vm640_vm8, 65537, %v1437_v52  ;;  %v572_v54 = vsel %vm564_vm7, 65537, %v1437_v52 }
  0x17   : > { %s1251_s18 = sshll.u32 %s273_s17, 6  ;;  %vm565_vm12 = vmpackc.low %vm1597_vm6, %vm1597_vm6  ;;  %v649_v58 = vsel %vm641_vm10, 65537, %v1437_v52  ;;  %v477_v0 = vand.u32 7, %v1638_v47  ;;  %vm1699_vm5 = vcmp.gt.s32.totalorder %v456_v48, 0  ;;  %vm1706_vm6 = vcmp.gt.s32.totalorder %v463_v50, 0  ;;  %s1445_s17 = smov 64  }
  0x18   : > { %s276_s21 = scalar_lea.vmem %s2120_s0, %s1251_s18  ;;  %vm566_vm14 = vmpackc.low %vm1610_vm9, %vm1610_vm9  ;;  %v573_v55 = vsel %vm565_vm12, 65537, %v1437_v52  ;;  %v1227_v19 = vcombine.low %v648_v53, %v649_v58  ;;  %vm1728_vm7 = vcmp.gt.s32.totalorder %v470_v60, 0  ;;  %s1442_s18 = smov 24  }
  0x19   : > { %v1547_v2 = vld [vmem:[%s276_s21] sm:$0xff]  ;;  %v1549_v3 = vld [vmem:[%s276_s21 + $0x8] sm:$0xff]  ;;  %v1551_v4 = vld [vmem:[%s276_s21 + $0x10] sm:$0xff]  ;;  %v574_v59 = vsel %vm566_vm14, 65537, %v1437_v52  ;;  %v1223_v15 = vcombine.low %v572_v54, %v573_v55  ;;  %vm1741_vm9 = vcmp.gt.s32.totalorder %v477_v0, 0 }
  0x1a   : > { %v288_v5 = vpack.c.bf16 %v1549_v3, %v1547_v2  ;;  %v1555_v6 = vld [vmem:[%s276_s21 + $0x18] sm:$0xff]  ;;  %v1557_v7 = vld [vmem:[%s276_s21 + $0x20] sm:$0xff]  ;;  %v1559_v8 = vld [vmem:[%s276_s21 + $0x28] sm:$0xff] }
  0x1b   : > { %v289_v9 = vpack.c.bf16 %v1555_v6, %v1551_v4  ;;  %v290_v10 = vpack.c.bf16 %v1559_v8, %v1557_v7  ;;  %v1568_v11 = vld [vmem:[%s276_s21 + $0x30] sm:$0xff]  ;;  %v1570_v12 = vld [vmem:[%s276_s21 + $0x38] sm:$0xff]  ;;  %vm567_vm2 = vmpackc.low %vm1620_vm11, %vm1620_vm11  ;;  %vm1752_vm11 = vcmp.ne.s16.totalorder %v1223_v15, 0 }
  0x1c   : > { %1277 = vmatprep.mubr.msk.bf16.mxu0 %vm315_vm0, %v288_v5  ;;  %v291_v13 = vpack.c.bf16 %v1570_v12, %v1568_v11  ;;  %vm642_vm3 = vmpackc.low %vm1631_vm13, %vm1631_vm13  ;;  %v575_v63 = vsel %vm567_vm2, 65537, %v1437_v52  ;;  %vm1763_vm13 = vcmp.ne.s16.totalorder %v1227_v19, 0 }
  0x1d   : > { %1278 = vmatmul.mubr.msk.bf16.vlgmr.msra.gmra.mrb[0].mxu0 %vm315_vm0, %v289_v9  ;;  %vm643_vm4 = vmpackc.low %vm1642_vm15, %vm1642_vm15  ;;  %v650_v20 = vsel %vm642_vm3, 65537, %v1437_v52 }
  0x1e   : > { %1281 = vmatprep.mubr.msk.bf16.mxu0 %vm315_vm0, %v290_v10  ;;  %v651_v24 = vsel %vm643_vm4, 65537, %v1437_v52  ;;  %vm568_vm8 = vmpackc.low %vm1699_vm5, %vm1699_vm5  ;;  %vm1875_vm5 = vcmp.lt.s32.totalorder %v470_v60, 7 }
  0x1f   : > { %vm569_vm10 = vmpackc.low %vm1706_vm6, %vm1706_vm6  ;;  %v1228_v49 = vcombine.low %v650_v20, %v651_v24  ;;  %v1367_v20 = vld [vmem:[%s2122_s2] sm:$0xff]   ;;  %vm1884_vm6 = vcmp.lt.s32.totalorder %v477_v0, 7 }
  0x20   : > { %vm570_vm12 = vmpackc.low %vm1728_vm7, %vm1728_vm7  ;;  %v577_v58 = vsel %vm569_vm10, 65537, %v1437_v52  ;;  %1285 = vmatprep.subr.bf16.mxu1 %v1367_v20  ;;  %vm932_vm7 = vcmask 1043456  }
  0x21   : > { %vm571_vm15 = vmpackc.low %vm1741_vm9, %vm1741_vm9  ;;  %vm1806_vm2 = vcmp.ne.s16.totalorder %v1228_v49, 0  ;;  %1286 = vmatpush3.bf16.msra.mxu1 %v1367_v20  ;;  %vm1897_vm9 = vcmp.lt.s32.totalorder %v456_v48, 7  ;;  %v934_v60 = vsel %vm932_vm7, %v1371_v44, 0 }
  0x22   : > { %vm647_vm10 = vmpackc.low %vm1884_vm6, %vm1884_vm6  ;;  %vm827_vm6 = vcmask 195584  }
  0x25   : > { %1282 = vmatmul.mubr.msk.bf16.gmra.mrb[4].mxu0 %vm315_vm0, %v291_v13  ;;  %v600_v13 = vld [vmem:[#allocation2 + $0x8] sm:$0xff] }
  0xf0   : > { %v1279_v25 = vpop.f32.mrb[0].mxu0 }
  0xf1   : > { %v371_v28 = vadd.f32 %v1279_v25, %v1581_v21  ;;  %v362_v29 = vpop.f32.mrb[1].mxu0 }
  0xf2   : > { %v363_v31 = vadd.f32 %v1581_v21, %v362_v29  ;;  %v1280_v32 = vpop.f32.mrb[2].mxu0 }
  0xf3   : > { %v395_v35 = vmax.f32 %v371_v28, 0.0  ;;  %v374_v36 = vadd.f32 %v1280_v32, %v1581_v21  ;;  %v365_v37 = vpop.f32.mrb[3].mxu0 }
  0xf4   : > { %v393_v40 = vmax.f32 %v363_v31, 0.0  ;;  %v366_v41 = vadd.f32 %v1581_v21, %v365_v37 }
  0xf5   : > { %409 = vst.msk [vmem:[#allocation2 + $0x20] sm:$0xff] %vm401_vm1, %v395_v35  ;;  %v396_v43 = vmax.f32 %v374_v36, 0.0 }
  0xf6   : > { %407 = vst.msk [vmem:[#allocation2 + $0x10] sm:$0xff] %vm401_vm1, %v393_v40  ;;  %v394_v45 = vmax.f32 %v366_v41, 0.0 }
  0xf7   : > { %410 = vst.msk [vmem:[#allocation2 + $0x28] sm:$0xff] %vm401_vm1, %v396_v43 }
  0xf8   : > { %408 = vst.msk [vmem:[#allocation2 + $0x18] sm:$0xff] %vm401_vm1, %v394_v45  ;;  %v1283_v51 = vpop.f32.mrb[4].mxu0 }
  0xf9   : > { %v387_v56 = vadd.f32 %v1283_v51, %v1581_v21  ;;  %v378_v57 = vpop.f32.mrb[5].mxu0 }
  0xfa   : > { %v379_v61 = vadd.f32 %v1581_v21, %v378_v57  ;;  %v1284_v62 = vpop.f32.mrb[6].mxu0  ;;  %v576_v57 = vsel %vm568_vm8, 65537, %v1437_v52  ;;  %vm646_vm8 = vmpackc.low %vm1875_vm5, %vm1875_vm5 }
  0xfb   : > { %v399_v5 = vmax.f32 %v387_v56, 0.0  ;;  %v390_v9 = vadd.f32 %v1284_v62, %v1581_v21  ;;  %v381_v10 = vpop.f32.mrb[7].mxu0  ;;  %v578_v56 = vsel %vm570_vm12, 65537, %v1437_v52  ;;  %v579_v62 = vsel %vm571_vm15, 65537, %v1437_v52  ;;  %vm644_vm12 = vmpackc.low %vm1897_vm9, %vm1897_vm9 }
  0xfc   : > { %v397_v17 = vmax.f32 %v379_v61, 0.0  ;;  %v382_v18 = vadd.f32 %v1581_v21, %v381_v10  ;;  %v1224_v21 = vcombine.low %v574_v59, %v575_v63  ;;  %v603_v29 = vld [vmem:[#allocation2 + $0x20] sm:$0xff]  ;;  %vm853_vm9 = vcmask 392192  }
  0xfd   : > { %413 = vst.msk [vmem:[#allocation2 + $0x40] sm:$0xff] %vm401_vm1, %v399_v5  ;;  %v400_v22 = vmax.f32 %v390_v9, 0.0  ;;  %v601_v23 = vld [vmem:[#allocation2 + $0x10] sm:$0xff] }
  0xfe   : > { %v1724_v25 = vld [vmem:[#allocation2 + $0xf] sm:$0xff]  ;;  %411 = vst.msk [vmem:[#allocation2 + $0x30] sm:$0xff] %vm401_vm1, %v397_v17  ;;  %v398_v27 = vmax.f32 %v382_v18, 0.0  ;;  %v608_v28 = vpack.c.bf16 %v601_v23, %v600_v13  ;;  %v1767_v46 = vld [vmem:[#allocation2 + $0x21] sm:$0xff]  ;;  %vm1769_vm14 = vcmp.ne.s16.totalorder %v1224_v21, 0  ;;  %v1225_v13 = vcombine.low %v576_v57, %v577_v58 }
  0xff   : > { %v1736_v30 = vld [vmem:[#allocation2 + $0x28] sm:$0xff]  ;;  %v544_v31 = vpack.c.bf16 %v1724_v25, %v536_v14  ;;  %414 = vst.msk [vmem:[#allocation2 + $0x48] sm:$0xff] %vm401_vm1, %v400_v22  ;;  %v602_v33 = vld [vmem:[#allocation2 + $0x18] sm:$0xff]  ;;  %v1226_v14 = vcombine.low %v578_v56, %v579_v62  ;;  %v652_v62 = vsel %vm644_vm12, 65537, %v1437_v52  ;;  %vm923_vm12 = vcmask 588800  }
 0x100   : > { %v687_v35 = vpack.c.bf16 %v1736_v30, %v603_v29  ;;  %v612_v36 = vld [vmem:[#allocation2 + $0x9] sm:$0xff]  ;;  %v1750_v37 = vld [vmem:[#allocation2 + $0x11] sm:$0xff]  ;;  %412 = vst.msk [vmem:[#allocation2 + $0x38] sm:$0xff] %vm401_vm1, %v398_v27  ;;  %717 = vrot.lane.b32.xlu0 %v608_v28, %s1438_s29  ;;  %v539_v41 = vld [vmem:[#allocation2 + $0x1f] sm:$0xff]  ;;  %v609_v54 = vpack.c.bf16 %v603_v29, %v602_v33  ;;  %v686_v9 = vpack.c.bf16 %v602_v33, %v601_v23  ;;  %vm1827_vm3 = vcmp.ne.s16.totalorder %v1225_v13, 0 }
 0x101   : > { %v620_v40 = vpack.c.bf16 %v1750_v37, %v612_v36  ;;  %v538_v42 = vld [vmem:[#allocation2 + $0x17] sm:$0xff]  ;;  %v1780_v55 = vsel %vm1752_vm11, %v544_v31, 0  ;;  %v540_v5 = vld [vmem:[#allocation2 + $0x27] sm:$0xff]  ;;  %vm1836_vm4 = vcmp.ne.s16.totalorder %v1226_v14, 0 }
 0x102   : > { %755 = vrot.lane.b32.xlu1 %v687_v35, %s1439_s8  ;;  %v614_v45 = vld [vmem:[#allocation2 + $0x19] sm:$0xff]  ;;  %v1773_v53 = vpack.c.bf16 %v539_v41, %v538_v42  ;;  %v678_v16 = vpack.c.bf16 %v540_v5, %v539_v41  ;;  %v677_v24 = vpack.c.bf16 %v538_v42, %v1724_v25  ;;  %v1368_v28 = vld [vmem:[%s2122_s2 + $0x8] sm:$0xff]   ;;  %v1369_v35 = vld [vmem:[%s2122_s2 + $0x10] sm:$0xff]  }
 0x103   : > { %v672_v59 = vsel %vm1763_vm13, %v620_v40, 0  ;;  %v1799_v61 = vpack.c.bf16 %v1767_v46, %v614_v45  ;;  %1287 = vmatprep.subr.bf16.mxu1 %v1368_v28  ;;  %v691_v33 = vpack.c.bf16 %v614_v45, %v1750_v37  ;;  %v707_v42 = vld [vmem:[#allocation2 + $0x51] sm:$0xff] }
 0x104   : > { %719 = vrot.lane.b32.xlu0 %v609_v54, %s1438_s29  ;;  %v597_v63 = vsel %vm1769_vm14, %v1773_v53, 0  ;;  %v682_v27 = vsel %vm1769_vm14, %v678_v16, 0  ;;  %v681_v32 = vsel %vm1752_vm11, %v677_v24, 0  ;;  %1288 = vmatpush3.bf16.msra.mxu1 %v1368_v28  ;;  %v701_v41 = vsel %vm1752_vm11, %v1773_v53, 0  ;;  %v607_v43 = vld [vmem:[#allocation2 + $0x40] sm:$0xff] }
 0x105   : > { %v1810_v10 = vld [vmem:[#allocation2 + $0x2f] sm:$0xff]  ;;  %v673_v15 = vsel %vm1806_vm2, %v1799_v61, 0  ;;  %1289 = vmatprep.subr.bf16.mxu1 %v1369_v35  ;;  %v695_v40 = vsel %vm1763_vm13, %v691_v33, 0  ;;  %v709_v0 = vsel %vm1763_vm13, %v1799_v61, 0  ;;  %vm1911_vm11 = vcmp.lt.s32.totalorder %v463_v50, 7 }
 0x106   : > { %729 = vrot.lane.b32.xlu1 %v672_v59, %s1440_s9  ;;  %v1818_v17 = vpack.c.bf16 %v1810_v10, %v540_v5  ;;  %v605_v26 = vld [vmem:[#allocation2 + $0x30] sm:$0xff]  ;;  %v685_v49 = vld [vmem:[#allocation2 + $0x48] sm:$0xff]  ;;  %v654_v50 = vsel %vm646_vm8, 65537, %v1437_v52  ;;  %vm645_vm13 = vmpackc.low %vm1911_vm11, %vm1911_vm11  ;;  %vm844_vm8 = vcmask 326656   ;;  %vm871_vm11 = vcmask 523264  }
 0x107   : > { %v1820_v18 = vld [vmem:[#allocation2 + $0x37] sm:$0xff]  ;;  %v1822_v19 = vld [vmem:[#allocation2 + $0x3f] sm:$0xff]  ;;  %v610_v31 = vpack.c.bf16 %v605_v26, %v1736_v30  ;;  %v616_v36 = vld [vmem:[#allocation2 + $0x29] sm:$0xff]  ;;  %v689_v56 = vpack.c.bf16 %v685_v49, %v607_v43  ;;  %v653_v5 = vsel %vm645_vm13, 65537, %v1437_v52 }
 0x108   : > { %753 = vrot.lane.b32.xlu0 %v686_v9, %s1439_s8  ;;  %v1833_v23 = vpack.c.bf16 %v1822_v19, %v1820_v18  ;;  %v598_v25 = vsel %vm1827_vm3, %v1818_v17, 0  ;;  %v1370_v30 = vld [vmem:[%s2122_s2 + $0x18] sm:$0xff]   ;;  %v692_v37 = vpack.c.bf16 %v616_v36, %v1767_v46  ;;  %1290 = vmatpush3.bf16.msra.mxu1 %v1369_v35  ;;  %v702_v48 = vsel %vm1769_vm14, %v1818_v17, 0  ;;  %v619_v58 = vld [vmem:[#allocation2 + $0x41] sm:$0xff]  ;;  %v690_v61 = vld [vmem:[#allocation2 + $0x49] sm:$0xff] }
 0x109   : > { %1291 = vmatprep.subr.bf16.mxu1 %v1370_v30  ;;  %v606_v38 = vld [vmem:[#allocation2 + $0x38] sm:$0xff]  ;;  %v694_v14 = vpack.c.bf16 %v690_v61, %v619_v58  ;;  %v676_v20 = vld [vmem:[#allocation2 + $0x47] sm:$0xff]  ;;  %v699_v24 = vld [vmem:[#allocation2 + $0x4f] sm:$0xff]  ;;  %v679_v1 = vpack.c.bf16 %v1820_v18, %v1810_v10 }
 0x10a   : > { %731 = vrot.lane.b32.xlu1 %v673_v15, %s1440_s9  ;;  %v599_v29 = vsel %vm1836_vm4, %v1833_v23, 0  ;;  %v696_v45 = vsel %vm1806_vm2, %v692_v37, 0  ;;  %v688_v39 = vpack.c.bf16 %v606_v38, %v605_v26  ;;  %v617_v57 = vld [vmem:[#allocation2 + $0x31] sm:$0xff]  ;;  %v611_v9 = vpack.c.bf16 %v607_v43, %v606_v38 }
 0x10b   : > { %v622_v13 = vpack.c.bf16 %v617_v57, %v616_v36  ;;  %v1229_v15 = vcombine.low %v652_v62, %v653_v5  ;;  %v700_v28 = vpack.c.bf16 %v699_v24, %v676_v20  ;;  %v683_v36 = vsel %vm1827_vm3, %v679_v1, 0 }
 0x10c   : > { %786 = vrot.lane.b32.xlu0 %v609_v54, %s1441_s15  ;;  %1292 = vmatpush3.bf16.msra.mxu1 %v1370_v30  ;;  %v655_v54 = vsel %vm647_vm10, 65537, %v1437_v52  ;;  %v680_v37 = vpack.c.bf16 %v676_v20, %v1822_v19  ;;  %v708_v19 = vpack.c.bf16 %v707_v42, %v690_v61  ;;  %vm862_vm10 = vcmask 457728  }
 0x10d   : > { %1313 = vmatprep.subr.msk.bf16.mxu1 %vm932_vm7, %v1371_v44  ;;  %v1230_v59 = vcombine.low %v654_v50, %v655_v54  ;;  %v710_v26 = vsel %vm1806_vm2, %v622_v13, 0  ;;  %vm1948_vm5 = vcmp.ne.s16.totalorder %v1229_v15, 0  ;;  %v704_v33 = vsel %vm1836_vm4, %v700_v28, 0 }
 0x10e   : > { %743 = vrot.lane.b32.xlu1 %v682_v27, %s1442_s18  ;;  %v684_v18 = vsel %vm1836_vm4, %v680_v37, 0  ;;  %vm818_vm2 = vcmask 130048  }
 0x10f   : > { %vm1939_vm15 = vcmp.ne.s16.totalorder %v1230_v59, 0 }
 0x110   : > { %741 = vrot.lane.b32.xlu0 %v681_v32, %s1442_s18  ;;  %1294 = vmatpush3.bf16.msra.mxu1 %v934_v60  ;;  %v698_v52 = vsel %vm1939_vm15, %v694_v14, 0  ;;  %v674_v32 = vsel %vm1948_vm5, %v622_v13, 0  ;;  %v712_v47 = vsel %vm1939_vm15, %v708_v19, 0 }
 0x112   : > { %788 = vrot.lane.b32.xlu1 %v610_v31, %s1441_s15 }
 0x114   : > { %765 = vrot.lane.b32.xlu0 %v695_v40, %s1443_s23 }
 0x116   : > { %721 = vrot.lane.b32.xlu1 %v610_v31, %s1438_s29  ;;  %v618_v31 = vld [vmem:[#allocation2 + $0x39] sm:$0xff] }
 0x117   : > { %v623_v35 = vpack.c.bf16 %v619_v58, %v618_v31  ;;  %v693_v40 = vpack.c.bf16 %v618_v31, %v617_v57 }
 0x118   : > { %777 = vrot.lane.b32.xlu0 %v701_v41, %s1444_s13  ;;  %v705_v41 = vld [vmem:[#allocation2 + $0x50] sm:$0xff] }
 0x119   : > { %v675_v30 = vsel %vm1939_vm15, %v623_v35, 0  ;;  %v697_v10 = vsel %vm1948_vm5, %v693_v40, 0  ;;  %v706_v46 = vpack.c.bf16 %v705_v41, %v685_v49  ;;  %v711_v44 = vsel %vm1948_vm5, %v623_v35, 0 }
 0x11a   : > { %767 = vrot.lane.b32.xlu1 %v696_v45, %s1443_s23  ;;  %v703_v45 = vsel %vm1827_vm3, %v1833_v23, 0 }
 0x11c   : > { %798 = vrot.lane.b32.xlu0 %v709_v0, %s1445_s17 }
 0x11e   : > { %779 = vrot.lane.b32.xlu1 %v702_v48, %s1444_s13 }
 0x120   : > { %757 = vrot.lane.b32.xlu0 %v688_v39, %s1439_s8 }
 0x122   : > { %759 = vrot.lane.b32.xlu1 %v689_v56, %s1439_s8 }
 0x124   : > { %790 = vrot.lane.b32.xlu0 %v611_v9, %s1441_s15 }
 0x126   : > { %723 = vrot.lane.b32.xlu1 %v611_v9, %s1438_s29 }
 0x128   : > { %800 = vrot.lane.b32.xlu0 %v710_v26, %s1445_s17 }
 0x12a   : > { %771 = vrot.lane.b32.xlu1 %v698_v52, %s1443_s23 }
 0x12c   : > { %733 = vrot.lane.b32.xlu0 %v674_v32, %s1440_s9 }
 0x12e   : > { %783 = vrot.lane.b32.xlu1 %v704_v33, %s1444_s13 }
 0x130   : > { %745 = vrot.lane.b32.xlu0 %v683_v36, %s1442_s18 }
 0x132   : > { %735 = vrot.lane.b32.xlu1 %v675_v30, %s1440_s9 }
 0x134   : > { %769 = vrot.lane.b32.xlu0 %v697_v10, %s1443_s23  ;;  %s271_s23 = scalar_lea.vmem [#allocation3], %s1213_s22 }
 0x135   : > { %s1147_s14 = sshll.u32 %s271_s23, 4  ;;  %s2072_s14 = int_to_ptr.vmem [resolvable:$true] %s1147_s14 }
 0x136   : > { %747 = vrot.lane.b32.xlu1 %v684_v18, %s1442_s18  ;;  %s1372_s9 = scalar_lea.vmem %s2072_s14, 1024 }
 0x137   : > { %p1373_p11 = scmp.ne.s32.totalorder %s2072_s14, %s1372_s9 }
 0x138   : > { %781 = vrot.lane.b32.xlu0 %v703_v45, %s1444_s13  ;;  %s1252_s13 = sshll.u32 %s1509_s28, 10  ;;  %s2078_s28 = scalar_lea.sflag [#allocation4], %s269_s19 }
 0x139   : > { %s2069_s8 = scalar_lea.hbm %s2127_s7, %s1252_s13  ;;  %p1374_p12 = pnand %p1373_p11, %p1526_p5 }
 0x13a   : > { %792 = vrot.lane.b32.xlu1 %v706_v46, %s1441_s15  ;;  %s1446_s15 = smov [#allocation3]  }
 0x13b   : > { %p1375_p13 = pneg %p1374_p12  ;;  %s1376_s18 = sshll.u32 %s1446_s15, 4  ;;  %s1377_s18 = int_to_ptr.vmem [resolvable:$false] %s1376_s18 }
 0x13c   : > { %802 = vrot.lane.b32.xlu0 %v711_v44, %s1445_s17  ;;  %s1378_s20 = scalar_lea.vmem %s1377_s18, 2048  ;;  %p1379_p0 = scmp.lt.s32.totalorder %s2072_s14, %s1377_s18 }
 0x13d   : > { %p1380_p1 = scmp.lt.s32.totalorder %s1378_s20, %s1372_s9 }
 0x13e   : > { %804 = vrot.lane.b32.xlu1 %v712_v47, %s1445_s17 }
 0x13f   : > { %p1381_p2 = por %p1380_p1, %p1379_p0 }
 0x141   : > { %p1382_p3 = pnand %p1381_p2, %p1375_p13 }
 0x172   : > { %v718_v60 = vpop.permute.xlu0 %717 }
 0x173   : > { %v808_v56 = vsel %vm401_vm1, %v1780_v55, %v718_v60 }
 0x174   : > { %v756_v0 = vpop.permute.xlu1 %755 }
 0x176   : > { %v720_v38 = vpop.permute.xlu0 %719 }
 0x177   : > { %v811_v24 = vsel %vm401_vm1, %v597_v63, %v720_v38 }
 0x178   : > { %v730_v34 = vpop.permute.xlu1 %729 }
 0x179   : > { %v820_v57 = vsel %vm818_vm2, %v808_v56, %v730_v34  ;;  %v1231_v56 = vld [vmem:[%s2125_s5] ss:$0 sm:$0xff] }
 0x17a   : > { %v754_v48 = vpop.permute.xlu0 %753 }
 0x17c   : > { %v732_v43 = vpop.permute.xlu1 %731 }
 0x17d   : > { %v822_v26 = vsel %vm818_vm2, %v811_v24, %v732_v43 }
 0x17e   : > { %v787_v49 = vpop.permute.xlu0 %786 }
 0x180   : > { %v744_v39 = vpop.permute.xlu1 %743 }
 0x181   : > { %v831_v52 = vsel %vm827_vm6, %v822_v26, %v744_v39 }
 0x182   : > { %v742_v50 = vpop.permute.xlu0 %741  ;;  %v839_v31 = vsel %vm315_vm0, %v831_v52, %v756_v0 }
 0x183   : > { %v829_v58 = vsel %vm827_vm6, %v820_v57, %v742_v50  ;;  %v1013_v50 = vld [vmem:[%s2123_s3] sm:$0xf] }
 0x184   : > { %v789_v54 = vpop.permute.xlu1 %788  ;;  %v837_v62 = vsel %vm315_vm0, %v829_v58, %v754_v48  ;;  %1314 = vmatprep.subr.msk.bf16.mxu0 %vm932_vm7, %v1013_v50 }
 0x186   : > { %v766_v59 = vpop.permute.xlu0 %765 }
 0x187   : > { %v846_v5 = vsel %vm844_vm8, %v837_v62, %v766_v59 }
 0x188   : > { %v722_v61 = vpop.permute.xlu1 %721 }
 0x189   : > { %v814_v18 = vsel %vm401_vm1, %v598_v25, %v722_v61 }
 0x18a   : > { %v778_v9 = vpop.permute.xlu0 %777 }
 0x18b   : > { %v855_v13 = vsel %vm853_vm9, %v846_v5, %v778_v9 }
 0x18c   : > { %v768_v14 = vpop.permute.xlu1 %767  ;;  %v864_v15 = vsel %vm862_vm10, %v855_v13, %v787_v49 }
 0x18d   : > { %v848_v32 = vsel %vm844_vm8, %v839_v31, %v768_v14 }
 0x18e   : > { %v799_v55 = vpop.permute.xlu0 %798 }
 0x18f   : > { %v873_v20 = vsel %vm871_vm11, %v864_v15, %v799_v55 }
 0x190   : > { %v780_v16 = vpop.permute.xlu1 %779  ;;  %1295 = vmatprep.mubr.msk.bf16.mxu1 %vm923_vm12, %v873_v20 }
 0x191   : > { %v857_v33 = vsel %vm853_vm9, %v848_v32, %v780_v16 }
 0x192   : > { %v758_v27 = vpop.permute.xlu0 %757  ;;  %v866_v53 = vsel %vm862_vm10, %v857_v33, %v789_v54  ;;  %v1034_v54 = vsel %vm932_vm7, %v1013_v50, 0 }
 0x193   : > { %1304 = vmatpush3.bf16.msra.mxu0 %v1034_v54 }
 0x194   : > { %v760_v28 = vpop.permute.xlu1 %759 }
 0x196   : > { %v791_v1 = vpop.permute.xlu0 %790 }
 0x198   : > { %v724_v51 = vpop.permute.xlu1 %723 }
 0x199   : > { %v817_v42 = vsel %vm401_vm1, %v599_v29, %v724_v51 }
 0x19a   : > { %v801_v35 = vpop.permute.xlu0 %800 }
 0x19b   : > { %v875_v63 = vsel %vm871_vm11, %v866_v53, %v801_v35 }
 0x19c   : > { %v772_v36 = vpop.permute.xlu1 %771  ;;  %1296 = vmatmul.mubr.msk.bf16.vlgmr.msra.gmra.mrb[0].mxu1 %vm923_vm12, %v875_v63 }
 0x19e   : > { %v734_v40 = vpop.permute.xlu0 %733 }
 0x19f   : > { %v824_v41 = vsel %vm818_vm2, %v814_v18, %v734_v40 }
 0x1a0   : > { %v784_v30 = vpop.permute.xlu1 %783 }
 0x1a2   : > { %v746_v37 = vpop.permute.xlu0 %745 }
 0x1a3   : > { %v833_v45 = vsel %vm827_vm6, %v824_v41, %v746_v37 }
 0x1a4   : > { %v736_v10 = vpop.permute.xlu1 %735  ;;  %v841_v17 = vsel %vm315_vm0, %v833_v45, %v758_v27 }
 0x1a5   : > { %v826_v19 = vsel %vm818_vm2, %v817_v42, %v736_v10 }
 0x1a6   : > { %v770_v46 = vpop.permute.xlu0 %769 }
 0x1a7   : > { %v850_v47 = vsel %vm844_vm8, %v841_v17, %v770_v46 }
 0x1a8   : > { %v748_v44 = vpop.permute.xlu1 %747 }
 0x1a9   : > { %v835_v22 = vsel %vm827_vm6, %v826_v19, %v748_v44 }
 0x1aa   : > { %v843_v25 = vsel %vm315_vm0, %v835_v22, %v760_v28  ;;  %v782_v60 = vpop.permute.xlu0 %781 }
 0x1ab   : > { %v852_v21 = vsel %vm844_vm8, %v843_v25, %v772_v36  ;;  %v859_v23 = vsel %vm853_vm9, %v850_v47, %v782_v60 }
 0x1ac   : > { %v793_v29 = vpop.permute.xlu1 %792  ;;  %v861_v0 = vsel %vm853_vm9, %v852_v21, %v784_v30  ;;  %v868_v38 = vsel %vm862_vm10, %v859_v23, %v791_v1  ;;  %v1241_v30 = vld [vmem:[%s2126_s6] ss:$0 sm:$0xff] }
 0x1ad   : > { %v870_v48 = vsel %vm862_vm10, %v861_v0, %v793_v29 }
 0x1ae   : > { %v803_v34 = vpop.permute.xlu0 %802 }
 0x1af   : > { %v877_v43 = vsel %vm871_vm11, %v868_v38, %v803_v34 }
 0x1b0   : > { %v805_v49 = vpop.permute.xlu1 %804  ;;  %1299 = vmatprep.mubr.msk.bf16.mxu1 %vm923_vm12, %v877_v43 }
 0x1b1   : > { %v879_v39 = vsel %vm871_vm11, %v870_v48, %v805_v49 }
 0x1b2   : > { %1300 = vmatmul.mubr.msk.bf16.gmra.mrb[4].mxu1 %vm923_vm12, %v879_v39 }
 0x26f   : > { %v1297_v57 = vpop.f32.mrb[0].mxu1 }
 0x270   : > { %v979_v58 = vadd.f32 %v1297_v57, %v1231_v56  ;;  %v970_v59 = vpop.f32.mrb[1].mxu1 }
 0x271   : > { %v971_v61 = vadd.f32 %v1231_v56, %v970_v59  ;;  %v1298_v62 = vpop.f32.mrb[2].mxu1 }
 0x272   : > { %v982_v5 = vadd.f32 %v1298_v62, %v1231_v56  ;;  %v973_v9 = vpop.f32.mrb[3].mxu1  ;;  %v1003_v14 = vmax.f32 %v979_v58, 0.0 }
 0x273   : > { %v974_v13 = vadd.f32 %v1231_v56, %v973_v9  ;;  %v1001_v15 = vmax.f32 %v971_v61, 0.0 }
 0x274   : > { %v1004_v55 = vmax.f32 %v982_v5, 0.0 }
 0x275   : > { %v1002_v16 = vmax.f32 %v974_v13, 0.0 }
 0x276   : > { %v1010_v20 = vpack.c.bf16 %v1004_v55, %v1003_v14 }
 0x277   : > { %v1009_v24 = vpack.c.bf16 %v1002_v16, %v1001_v15 }
 0x279   : > { %1305 = vmatprep.mubr.msk.bf16.mxu0 %vm401_vm1, %v1009_v24 }
 0x27a   : > { %1306 = vmatmul.mubr.msk.bf16.vlgmr.msra.gmra.mrb[8].mxu0 %vm401_vm1, %v1010_v20 }
 0x285   : > { %v1301_v26 = vpop.f32.mrb[4].mxu1 }
 0x286   : > { %v995_v52 = vadd.f32 %v1301_v26, %v1231_v56  ;;  %v986_v27 = vpop.f32.mrb[5].mxu1 }
 0x287   : > { %v987_v28 = vadd.f32 %v1231_v56, %v986_v27  ;;  %v1302_v31 = vpop.f32.mrb[6].mxu1 }
 0x288   : > { %v998_v32 = vadd.f32 %v1302_v31, %v1231_v56  ;;  %v989_v1 = vpop.f32.mrb[7].mxu1  ;;  %v1007_v51 = vmax.f32 %v995_v52, 0.0 }
 0x289   : > { %v990_v33 = vadd.f32 %v1231_v56, %v989_v1  ;;  %v1005_v35 = vmax.f32 %v987_v28, 0.0 }
 0x28a   : > { %v1008_v53 = vmax.f32 %v998_v32, 0.0 }
 0x28b   : > { %v1006_v63 = vmax.f32 %v990_v33, 0.0 }
 0x28c   : > { %v1012_v36 = vpack.c.bf16 %v1008_v53, %v1007_v51 }
 0x28d   : > { %v1011_v40 = vpack.c.bf16 %v1006_v63, %v1005_v35 }
 0x28f   : > { %1309 = vmatprep.mubr.msk.bf16.mxu0 %vm401_vm1, %v1011_v40 }
 0x290   : > { %1310 = vmatmul.mubr.msk.bf16.gmra.mrb[12].mxu0 %vm401_vm1, %v1012_v36 }
 0x34d   : > { %v1307_v37 = vpop.f32.mrb[8].mxu0 }
 0x34e   : > { %v1079_v10 = vadd.f32 %v1307_v37, %v1241_v30  ;;  %v1070_v18 = vpop.f32.mrb[9].mxu0 }
 0x34f   : > { %v1071_v41 = vadd.f32 %v1241_v30, %v1070_v18  ;;  %v1308_v42 = vpop.f32.mrb[10].mxu0 }
 0x350   : > { %v1111_v45 = vadd.f32 %v1079_v10, %v1551_v4  ;;  %v1082_v46 = vadd.f32 %v1308_v42, %v1241_v30  ;;  %v1073_v19 = vpop.f32.mrb[11].mxu0 }
 0x351   : > { %v1109_v44 = vadd.f32 %v1071_v41, %v1547_v2  ;;  %v1074_v22 = vadd.f32 %v1241_v30, %v1073_v19 }
 0x352   : > { %v1119_v17 = vmax.f32 %v1111_v45, 0.0  ;;  %v1112_v25 = vadd.f32 %v1082_v46, %v1555_v6 }
 0x353   : > { %v1117_v47 = vmax.f32 %v1109_v44, 0.0  ;;  %v1110_v60 = vadd.f32 %v1074_v22, %v1549_v3 }
 0x354   : > { %1127 = vst.msk [vmem:[%s271_s23 + $0x10] sm:$0xff] %vm315_vm0, %v1119_v17  ;;  %v1120_v21 = vmax.f32 %v1112_v25, 0.0 }
 0x355   : > { %1125 = vst.msk [vmem:[%s271_s23] sm:$0xff] %vm315_vm0, %v1117_v47  ;;  %v1118_v23 = vmax.f32 %v1110_v60, 0.0 }
 0x356   : > { %1128 = vst.msk [vmem:[%s271_s23 + $0x18] sm:$0xff] %vm315_vm0, %v1120_v21 }
 0x357   : > { %1126 = vst.msk [vmem:[%s271_s23 + $0x8] sm:$0xff] %vm315_vm0, %v1118_v23 }
 0x363   : > { %v1311_v2 = vpop.f32.mrb[12].mxu0 }
 0x364   : > { %v1095_v4 = vadd.f32 %v1311_v2, %v1241_v30  ;;  %v1086_v29 = vpop.f32.mrb[13].mxu0 }
 0x365   : > { %v1087_v0 = vadd.f32 %v1241_v30, %v1086_v29  ;;  %v1312_v6 = vpop.f32.mrb[14].mxu0 }
 0x366   : > { %v1115_v38 = vadd.f32 %v1095_v4, %v1568_v11  ;;  %v1098_v3 = vadd.f32 %v1312_v6, %v1241_v30  ;;  %v1089_v34 = vpop.f32.mrb[15].mxu0 }
 0x367   : > { %v1113_v48 = vadd.f32 %v1087_v0, %v1557_v7  ;;  %v1090_v43 = vadd.f32 %v1241_v30, %v1089_v34 }
 0x368   : > { %v1123_v49 = vmax.f32 %v1115_v38, 0.0  ;;  %v1116_v39 = vadd.f32 %v1098_v3, %v1570_v12 }
 0x369   : > { %v1121_v50 = vmax.f32 %v1113_v48, 0.0  ;;  %v1114_v54 = vadd.f32 %v1090_v43, %v1559_v8 }
 0x36a   : > { %1131 = vst.msk [vmem:[%s271_s23 + $0x30] sm:$0xff] %vm315_vm0, %v1123_v49  ;;  %v1124_v56 = vmax.f32 %v1116_v39, 0.0 }
 0x36b   : > { %1129 = vst.msk [vmem:[%s271_s23 + $0x20] sm:$0xff] %vm315_vm0, %v1121_v50  ;;  %v1122_v7 = vmax.f32 %v1114_v54, 0.0 }
 0x36c   : > { %1132 = vst.msk [vmem:[%s271_s23 + $0x38] sm:$0xff] %vm315_vm0, %v1124_v56 }
 0x36d   : > { %1130 = vst.msk [vmem:[%s271_s23 + $0x28] sm:$0xff] %vm315_vm0, %v1122_v7 }
 0x36e   : > { %1385 = shalt.err (!%p1382_p3)
}
 0x36f   : > { %s1386_s19 = scalar_lea.hbm %s2069_s8, 1024  ;;  %s1390_s23 = scalar_lea.hbm %s2127_s7, 2048 }
 0x370   : > { %p1387_p4 = scmp.ne.s32.totalorder %s2069_s8, %s1386_s19  ;;  %p1391_p9 = scmp.lt.u32.totalorder %s2069_s8, %s2127_s7 }
 0x371   : > { %p1392_p10 = scmp.lt.u32.totalorder %s1390_s23, %s1386_s19  ;;  %p1394_p12 = scmp.lt.u32.totalorder %s1386_s19, %s2069_s8 }
 0x372   : > { %p1388_p7 = pnand %p1387_p4, %p1526_p5 }
 0x373   : > { %p1393_p11 = por %p1392_p10, %p1391_p9 }
 0x374   : > { %p1389_p8 = pneg %p1388_p7 }
 0x375   : > { %p1395_p13 = por %p1394_p12, %p1393_p11 }
 0x377   : > { %p1396_p0 = pnand %p1395_p13, %p1389_p8 }
 0x379   : > { %1399 = shalt.err (!%p1396_p0)
}
 0x37a   : > { %s1447_s17 = smov 128  }
 0x37b   : > { %1315 = dma.vmem_to_hbm [thread:$0]  (%p1526_p5), %s2072_s14, 1024, %s2069_s8, %s2078_s28, %s1447_s17, %s1447_s17, %s1438_s29  }
 0x37c PF: > { %p1321_p1 = scmp.ge.s32.totalorder %s1434_s27, 2  ;;  %s1162_s9 = sand.u32 1, %s1422_s24  }
 0x37d   : > { %s1163_s15 = scalar_lea.sflag [#allocation4], %s1162_s9 }
 0x37e   : > { %p1318_p2 = pnand %p1321_p1, %p1530_p6 }
 0x380   : > { %1417 = dma.done.wait (!%p1318_p2), %s1163_s15, 1024  }
 0x381   : > { %1419 = vsyncadd (!%p1318_p2), %s1163_s15, 4294966272  ;;  %p17_p3 = scmp.ge.s32.totalorder %s1513_s30, 4   ;;  %s2178_s24 = smov %s1426_s25 }
 0x382   : > { %s2179_s25 = smov %s1430_s26  ;;  %s2180_s26 = smov %s1524_s10 }
 0x383   : > { %s2181_s27 = smov %s1513_s30  ;;  %19 = sbr.rel (!%p17_p3) target bundleno = 3 (0x3), region = 83 }
 0x38a   :  { %1168 = vsyncpa [#allocation4], 1 }
 0x38b   :  { %1170 = vsyncpa [#allocation4 + $0x1], 1 }

</bundles_post_ra>
